<compile_context>
chip_gen: v6e
topology: v6e:2x2x1
jax: 0.10.0
libtpu: 0.0.40
codegen_flags: <defaults>
</compile_context>

<pallas_src>
import functools

import jax
import jax.numpy as jnp
from jax.experimental import pallas as pl
from jax.experimental.pallas import tpu as pltpu

LANES = 128


def _round_up(n, m):
    return ((n + m - 1) // m) * m


def mlp_kernel(x_ref, p_ref, out_ref, *, n_features, hidden, h_pad):
    # x_ref:   (F, bt)            -- batch on lanes
    # p_ref:   (h_pad + a_pad, 128) resident param slab
    # out_ref: (a_pad, bt)

    # ----- Layer 1: h^T = tanh(W1^T @ x^T + b1), F broadcast-FMAs on the VPU -----
    w1b = p_ref[0:h_pad, :]                         # lanes 0..F-1 = W1^T, lane F = b1
    acc = w1b[:, 0:1] * x_ref[0:1, :]
    for k in range(1, n_features):                  # static unroll (F = 2)
        acc = acc + w1b[:, k:k + 1] * x_ref[k:k + 1, :]
    acc = acc + w1b[:, n_features:n_features + 1]   # + b1
    h = jnp.tanh(acc)                               # EUP slot, (h_pad, bt)

    # ----- Layer 2: out^T = W2^T @ h^T + b2, H broadcast-FMAs on the VPU -----
    a_pad = out_ref.shape[0]
    w2b = p_ref[h_pad:h_pad + a_pad, :]             # lanes 0..H-1 = W2^T, lane H = b2
    acc2 = w2b[:, 0:1] * h[0:1, :]
    for j in range(1, hidden):                      # static unroll (H = 10)
        acc2 = acc2 + w2b[:, j:j + 1] * h[j:j + 1, :]
    acc2 = acc2 + w2b[:, hidden:hidden + 1]         # + b2
    out_ref[...] = acc2.astype(out_ref.dtype)


def pack_params(w1, b1, w2, b2):
    """Pack all weights/biases into one resident (h_pad + a_pad, 128) f32 slab.

    Call this once at init / whenever the params change (hoisted off the
    forward hot path).  Padded rows/lanes are exactly zero, which keeps the
    padded-hidden-unit contributions zero in layer 2.
    """
    F, H = w1.shape
    A = w2.shape[1]
    assert F + 1 <= LANES and H + 1 <= LANES
    h_pad = _round_up(H, 8)
    a_pad = _round_up(A, 8)
    slab = jnp.zeros((h_pad + a_pad, LANES), jnp.float32)
    # Layer-1 block: rows [0, h_pad); lanes 0..F-1 hold W1^T, lane F holds b1.
    slab = slab.at[:H, :F].set(jnp.asarray(w1, jnp.float32).T)
    slab = slab.at[:H, F].set(jnp.asarray(b1, jnp.float32).reshape(-1))
    # Layer-2 block: rows [h_pad, h_pad+a_pad); lanes 0..H-1 hold W2^T, lane H = b2.
    slab = slab.at[h_pad:h_pad + A, :H].set(jnp.asarray(w2, jnp.float32).T)
    slab = slab.at[h_pad:h_pad + A, H].set(jnp.asarray(b2, jnp.float32).reshape(-1))
    meta = dict(n_features=F, hidden=H, n_actions=A, h_pad=h_pad, a_pad=a_pad)
    return slab, meta


def network_forward(x, slab, meta, *, block_b=8192):
    """x: (B, n_features) -> (B, n_actions).  `slab`/`meta` from pack_params()."""
    B, F = x.shape
    assert F == meta["n_features"]
    H, A = meta["hidden"], meta["n_actions"]
    h_pad, a_pad = meta["h_pad"], meta["a_pad"]
    n_rows = slab.shape[0]

    # Batch lives on the 128-lane axis -> pad/tile it in multiples of 128.
    b_target = _round_up(B, LANES)
    bt = min(_round_up(block_b, LANES), b_target)
    if b_target >= 2 * LANES:
        # Keep at least 2 grid steps (v7x has 2 TensorCores) without
        # inflating padding (b_target is already a multiple of 128).
        bt = min(bt, max(LANES, (b_target // 2) // LANES * LANES))
    b_pad = _round_up(b_target, bt)

    xt = jnp.asarray(x, jnp.float32).T              # (F, B), batch on lanes
    if b_pad != B:
        xt = jnp.pad(xt, ((0, 0), (0, b_pad - B)))

    kernel = functools.partial(mlp_kernel, n_features=F, hidden=H, h_pad=h_pad)
    out_t = pl.pallas_call(
        kernel,
        out_shape=jax.ShapeDtypeStruct((a_pad, b_pad), jnp.float32),
        grid=(b_pad // bt,),
        in_specs=[
            pl.BlockSpec((F, bt), lambda i: (0, i)),          # batch tile of x^T
            pl.BlockSpec((n_rows, LANES), lambda i: (0, 0)),  # resident param slab
        ],
        out_specs=pl.BlockSpec((a_pad, bt), lambda i: (0, i)),  # lane-dense out^T
        compiler_params=pltpu.CompilerParams(
            dimension_semantics=("parallel",)),
    )(xt, slab)
    return out_t[:A, :B].T


def init_params(key, n_features, n_actions, hidden=10):
    # Matches torch init: weights ~ Normal(0, 0.3), biases = 0.1.
    k1, k2 = jax.random.split(key)
    # PyTorch Linear stores weight as [out, in]; we keep [in, out] here.
    w1 = 0.3 * jax.random.normal(k1, (n_features, hidden), dtype=jnp.float32)
    b1 = jnp.full((1, hidden), 0.1, dtype=jnp.float32)
    w2 = 0.3 * jax.random.normal(k2, (hidden, n_actions), dtype=jnp.float32)
    b2 = jnp.full((1, n_actions), 0.1, dtype=jnp.float32)
    return w1, b1, w2, b2


if __name__ == "__main__":
    # MountainCar: observation has 2 features, 3 discrete actions.
    n_features, n_actions, batch = 2, 3, 8

    key = jax.random.PRNGKey(0)
    kx, kp = jax.random.split(key)
    x = jax.random.normal(kx, (batch, n_features), dtype=jnp.float32)
    w1, b1, w2, b2 = init_params(kp, n_features, n_actions)

    # Pack params once (hoisted out of the forward hot path).
    slab, meta = pack_params(w1, b1, w2, b2)

    fwd = jax.jit(functools.partial(network_forward, meta=meta))
    out = fwd(x, slab)
    jax.block_until_ready(out)

    # Reference check in plain JAX.
    ref = jnp.tanh(x @ w1 + b1) @ w2 + b2
    assert out.shape == (batch, n_actions)
    assert jnp.allclose(out, ref, atol=1e-5, rtol=1e-5)

    print("KERNEL_OK")
</pallas_src>

<mosaic_0001>
module attributes {stable_mosaic.version = 11 : i64} {
  func.func @mlp_kernel(%arg0: i32, %arg1: memref<2x128xf32, #tpu.memory_space<vmem>>, %arg2: memref<24x128xf32, #tpu.memory_space<vmem>>, %arg3: memref<8x128xf32, #tpu.memory_space<vmem>>) attributes {dimension_semantics = [#tpu.dimension_semantics<parallel>], iteration_bounds = array<i64: 1>, scalar_prefetch = 0 : i64, scratch_operands = 0 : i64, tpu.core_type = #tpu.core_type<tc>, window_params = [{transform_indices = @transform_0, window_bounds = array<i64: 2, 128>}, {pipeline_mode = #tpu.pipeline_mode<synchronous>, transform_indices = @transform_1, window_bounds = array<i64: 24, 128>}, {transform_indices = @transform_2, window_bounds = array<i64: 8, 128>}]} {
    %c0 = arith.constant 0 : index
    %c0_0 = arith.constant 0 : index
    %0 = vector.load %arg2[%c0, %c0_0] : memref<24x128xf32, #tpu.memory_space<vmem>>, vector<16x128xf32>
    %1 = vector.extract_strided_slice %0 {offsets = [0, 0], sizes = [16, 1], strides = [1, 1]} : vector<16x128xf32> to vector<16x1xf32>
    %c0_1 = arith.constant 0 : index
    %c0_2 = arith.constant 0 : index
    %2 = vector.load %arg1[%c0_1, %c0_2] : memref<2x128xf32, #tpu.memory_space<vmem>>, vector<1x128xf32>
    %3 = vector.broadcast %1 : vector<16x1xf32> to vector<16x128xf32>
    %4 = vector.broadcast %2 : vector<1x128xf32> to vector<16x128xf32>
    %5 = arith.mulf %3, %4 : vector<16x128xf32>
    %6 = vector.extract_strided_slice %0 {offsets = [0, 1], sizes = [16, 1], strides = [1, 1]} : vector<16x128xf32> to vector<16x1xf32>
    %c1 = arith.constant 1 : index
    %c0_3 = arith.constant 0 : index
    %7 = vector.load %arg1[%c1, %c0_3] : memref<2x128xf32, #tpu.memory_space<vmem>>, vector<1x128xf32>
    %8 = vector.broadcast %6 : vector<16x1xf32> to vector<16x128xf32>
    %9 = vector.broadcast %7 : vector<1x128xf32> to vector<16x128xf32>
    %10 = arith.mulf %8, %9 : vector<16x128xf32>
    %11 = arith.addf %5, %10 : vector<16x128xf32>
    %12 = vector.extract_strided_slice %0 {offsets = [0, 2], sizes = [16, 1], strides = [1, 1]} : vector<16x128xf32> to vector<16x1xf32>
    %13 = vector.broadcast %12 : vector<16x1xf32> to vector<16x128xf32>
    %14 = arith.addf %11, %13 : vector<16x128xf32>
    %15 = math.tanh %14 : vector<16x128xf32>
    %c16 = arith.constant 16 : index
    %c0_4 = arith.constant 0 : index
    %16 = vector.load %arg2[%c16, %c0_4] : memref<24x128xf32, #tpu.memory_space<vmem>>, vector<8x128xf32>
    %17 = vector.extract_strided_slice %16 {offsets = [0, 0], sizes = [8, 1], strides = [1, 1]} : vector<8x128xf32> to vector<8x1xf32>
    %18 = vector.extract_strided_slice %15 {offsets = [0, 0], sizes = [1, 128], strides = [1, 1]} : vector<16x128xf32> to vector<1x128xf32>
    %19 = vector.broadcast %17 : vector<8x1xf32> to vector<8x128xf32>
    %20 = vector.broadcast %18 : vector<1x128xf32> to vector<8x128xf32>
    %21 = arith.mulf %19, %20 : vector<8x128xf32>
    %22 = vector.extract_strided_slice %16 {offsets = [0, 1], sizes = [8, 1], strides = [1, 1]} : vector<8x128xf32> to vector<8x1xf32>
    %23 = vector.extract_strided_slice %15 {offsets = [1, 0], sizes = [1, 128], strides = [1, 1]} : vector<16x128xf32> to vector<1x128xf32>
    %24 = vector.broadcast %22 : vector<8x1xf32> to vector<8x128xf32>
    %25 = vector.broadcast %23 : vector<1x128xf32> to vector<8x128xf32>
    %26 = arith.mulf %24, %25 : vector<8x128xf32>
    %27 = arith.addf %21, %26 : vector<8x128xf32>
    %28 = vector.extract_strided_slice %16 {offsets = [0, 2], sizes = [8, 1], strides = [1, 1]} : vector<8x128xf32> to vector<8x1xf32>
    %29 = vector.extract_strided_slice %15 {offsets = [2, 0], sizes = [1, 128], strides = [1, 1]} : vector<16x128xf32> to vector<1x128xf32>
    %30 = vector.broadcast %28 : vector<8x1xf32> to vector<8x128xf32>
    %31 = vector.broadcast %29 : vector<1x128xf32> to vector<8x128xf32>
    %32 = arith.mulf %30, %31 : vector<8x128xf32>
    %33 = arith.addf %27, %32 : vector<8x128xf32>
    %34 = vector.extract_strided_slice %16 {offsets = [0, 3], sizes = [8, 1], strides = [1, 1]} : vector<8x128xf32> to vector<8x1xf32>
    %35 = vector.extract_strided_slice %15 {offsets = [3, 0], sizes = [1, 128], strides = [1, 1]} : vector<16x128xf32> to vector<1x128xf32>
    %36 = vector.broadcast %34 : vector<8x1xf32> to vector<8x128xf32>
    %37 = vector.broadcast %35 : vector<1x128xf32> to vector<8x128xf32>
    %38 = arith.mulf %36, %37 : vector<8x128xf32>
    %39 = arith.addf %33, %38 : vector<8x128xf32>
    %40 = vector.extract_strided_slice %16 {offsets = [0, 4], sizes = [8, 1], strides = [1, 1]} : vector<8x128xf32> to vector<8x1xf32>
    %41 = vector.extract_strided_slice %15 {offsets = [4, 0], sizes = [1, 128], strides = [1, 1]} : vector<16x128xf32> to vector<1x128xf32>
    %42 = vector.broadcast %40 : vector<8x1xf32> to vector<8x128xf32>
    %43 = vector.broadcast %41 : vector<1x128xf32> to vector<8x128xf32>
    %44 = arith.mulf %42, %43 : vector<8x128xf32>
    %45 = arith.addf %39, %44 : vector<8x128xf32>
    %46 = vector.extract_strided_slice %16 {offsets = [0, 5], sizes = [8, 1], strides = [1, 1]} : vector<8x128xf32> to vector<8x1xf32>
    %47 = vector.extract_strided_slice %15 {offsets = [5, 0], sizes = [1, 128], strides = [1, 1]} : vector<16x128xf32> to vector<1x128xf32>
    %48 = vector.broadcast %46 : vector<8x1xf32> to vector<8x128xf32>
    %49 = vector.broadcast %47 : vector<1x128xf32> to vector<8x128xf32>
    %50 = arith.mulf %48, %49 : vector<8x128xf32>
    %51 = arith.addf %45, %50 : vector<8x128xf32>
    %52 = vector.extract_strided_slice %16 {offsets = [0, 6], sizes = [8, 1], strides = [1, 1]} : vector<8x128xf32> to vector<8x1xf32>
    %53 = vector.extract_strided_slice %15 {offsets = [6, 0], sizes = [1, 128], strides = [1, 1]} : vector<16x128xf32> to vector<1x128xf32>
    %54 = vector.broadcast %52 : vector<8x1xf32> to vector<8x128xf32>
    %55 = vector.broadcast %53 : vector<1x128xf32> to vector<8x128xf32>
    %56 = arith.mulf %54, %55 : vector<8x128xf32>
    %57 = arith.addf %51, %56 : vector<8x128xf32>
    %58 = vector.extract_strided_slice %16 {offsets = [0, 7], sizes = [8, 1], strides = [1, 1]} : vector<8x128xf32> to vector<8x1xf32>
    %59 = vector.extract_strided_slice %15 {offsets = [7, 0], sizes = [1, 128], strides = [1, 1]} : vector<16x128xf32> to vector<1x128xf32>
    %60 = vector.broadcast %58 : vector<8x1xf32> to vector<8x128xf32>
    %61 = vector.broadcast %59 : vector<1x128xf32> to vector<8x128xf32>
    %62 = arith.mulf %60, %61 : vector<8x128xf32>
    %63 = arith.addf %57, %62 : vector<8x128xf32>
    %64 = vector.extract_strided_slice %16 {offsets = [0, 8], sizes = [8, 1], strides = [1, 1]} : vector<8x128xf32> to vector<8x1xf32>
    %65 = vector.extract_strided_slice %15 {offsets = [8, 0], sizes = [1, 128], strides = [1, 1]} : vector<16x128xf32> to vector<1x128xf32>
    %66 = vector.broadcast %64 : vector<8x1xf32> to vector<8x128xf32>
    %67 = vector.broadcast %65 : vector<1x128xf32> to vector<8x128xf32>
    %68 = arith.mulf %66, %67 : vector<8x128xf32>
    %69 = arith.addf %63, %68 : vector<8x128xf32>
    %70 = vector.extract_strided_slice %16 {offsets = [0, 9], sizes = [8, 1], strides = [1, 1]} : vector<8x128xf32> to vector<8x1xf32>
    %71 = vector.extract_strided_slice %15 {offsets = [9, 0], sizes = [1, 128], strides = [1, 1]} : vector<16x128xf32> to vector<1x128xf32>
    %72 = vector.broadcast %70 : vector<8x1xf32> to vector<8x128xf32>
    %73 = vector.broadcast %71 : vector<1x128xf32> to vector<8x128xf32>
    %74 = arith.mulf %72, %73 : vector<8x128xf32>
    %75 = arith.addf %69, %74 : vector<8x128xf32>
    %76 = vector.extract_strided_slice %16 {offsets = [0, 10], sizes = [8, 1], strides = [1, 1]} : vector<8x128xf32> to vector<8x1xf32>
    %77 = vector.broadcast %76 : vector<8x1xf32> to vector<8x128xf32>
    %78 = arith.addf %75, %77 : vector<8x128xf32>
    %c0_5 = arith.constant 0 : index
    %c0_6 = arith.constant 0 : index
    %79 = vector.load %arg3[%c0_5, %c0_6] : memref<8x128xf32, #tpu.memory_space<vmem>>, vector<8x128xf32>
    tpu.vector_store %arg3[%c0_5, %c0_6], %78 {strides = array<i32>} : memref<8x128xf32, #tpu.memory_space<vmem>>, vector<8x128xf32>,
    return
  }
  func.func @transform_0(%arg0: i32) -> (i32, i32) {
    %c0_i32 = arith.constant 0 : i32
    %c0_i32_0 = arith.constant 0 : i32
    return %c0_i32, %arg0 : i32, i32
  }
  func.func @transform_1(%arg0: i32) -> (i32, i32) {
    %c0_i32 = arith.constant 0 : i32
    %c0_i32_0 = arith.constant 0 : i32
    %c0_i32_1 = arith.constant 0 : i32
    return %c0_i32, %c0_i32_0 : i32, i32
  }
  func.func @transform_2(%arg0: i32) -> (i32, i32) {
    %c0_i32 = arith.constant 0 : i32
    %c0_i32_0 = arith.constant 0 : i32
    return %c0_i32, %arg0 : i32, i32
  }
}

</mosaic_0001>

<bundles_post_ra>
// kernel: network_forward.1
= control target key start
LH: loop header
LB: loop body
LE: loop exit
PB: predicated region body
PF: predicated region fallthrough
CT: control target
= control target key end

     0   :  { %7 = vsyncpa [#allocation3], 0  ;;  %s243_s9 = smov [#allocation2]   ;;  %s284_s0 = inlined_call_operand.vmem [shape: f32[2,128], index: 0, kind: input, shape index: {}]   ;;  %s285_s1 = inlined_call_operand.hbm [shape: f32[24,128], index: 1, kind: input, shape index: {}]   ;;  %s286_s2 = inlined_call_operand.vmem [shape: f32[8,128], index: 2, kind: output, shape index: {}]  }
   0x1   :  { %s15_s10 = sshll.u32 %s243_s9, 4  ;;  %s16_s10 = int_to_ptr.vmem [resolvable:$true] %s15_s10 }
   0x2   :  { %s229_s11 = scalar_lea.vmem %s16_s10, 384  ;;  %p234_p1 = scmp.lt.s32.totalorder %s16_s10, %s16_s10 }
   0x3   :  { %p230_p0 = scmp.ne.s32.totalorder %s16_s10, %s229_s11  ;;  %p235_p2 = scmp.lt.s32.totalorder %s229_s11, %s229_s11 }
   0x5   :  { %p236_p3 = por %p235_p2, %p234_p1 }
   0x7   :  { %p237_p4 = pnand %p236_p3, %p230_p0 }
   0x9   :  { %240 = shalt.err (!%p237_p4)
}
   0xa   :  { %s244_s12 = smov 128   ;;  %s245_s13 = smov 8  }
   0xb   :  { %21 = dma.hbm_to_vmem [thread:$0]  %s285_s1, 384, %s16_s10, [#allocation3], %s244_s12, %s244_s12, %s245_s13  }
   0xc   :  { %241 = dma.done.wait [#allocation3], 384  }
   0xd   :  { %242 = vsyncadd [#allocation3], 4294966912  ;;  %v246_v0 = vmov 2   ;;  %v247_v1 = vmov 0   ;;  %v25_v2 = vld [vmem:[#allocation2] sm:$0xff]  ;;  %v26_v3 = vld [vmem:[#allocation2 + $0x8] sm:$0xff]  ;;  %v79_v27 = vlaneseq }
   0xe   :  { %203 = vset.pattern.permute.xlu1 %v246_v0  ;;  %201 = vset.pattern.permute.xlu0 %v247_v1  ;;  %v248_v4 = vmov 1   ;;  %v73_v5 = vld [vmem:[#allocation2 + $0x10] sm:$0xff]  ;;  %v249_v6 = vmov 4   ;;  %v250_v7 = vmov 7   ;;  %v251_v8 = vmov 3  }
   0xf   :  { %62 = vperm.xlu1 %203, %v25_v2   ;;  %30 = vperm.xlu0 %201, %v25_v2   ;;  %v252_v9 = vmov 10   ;;  %v253_v10 = vmov 5   ;;  %v254_v11 = vmov 6   ;;  %v255_v12 = vmov 8   ;;  %v185_v16 = vld [vmem:[%s284_s0] ss:$0 sm:$0xff] }
  0x10   :  { %v256_v13 = vmov 9   ;;  %v186_v17 = vld [vmem:[%s284_s0 + $0x1] ss:$0 sm:$0xff]  ;;  %v80_v31 = vshrl.u32 %v79_v27, 7 }
  0x12   :  { %v81_v34 = vsub.s32 0, %v80_v31  ;;  %v100_v35 = vsub.s32 2, %v80_v31  ;;  %v90_v36 = vsub.s32 1, %v80_v31  ;;  %v110_v37 = vsub.s32 3, %v80_v31 }
  0x13   :  { %204 = vset.pattern.permute.xlu1 %v247_v1  ;;  %202 = vset.pattern.permute.xlu0 %v248_v4  ;;  %v120_v44 = vsub.s32 4, %v80_v31  ;;  %v130_v51 = vsub.s32 5, %v80_v31  ;;  %v150_v56 = vsub.s32 7, %v80_v31  ;;  %v140_v57 = vsub.s32 6, %v80_v31 }
  0x14   :  { %35 = vperm.xlu1 %204, %v26_v3   ;;  %46 = vperm.xlu0 %202, %v25_v2  }
  0x18   :  { %205 = vset.pattern.permute.xlu1 %v248_v4  ;;  %206 = vset.pattern.permute.xlu0 %v246_v0 }
  0x19   :  { %50 = vperm.xlu1 %205, %v26_v3   ;;  %66 = vperm.xlu0 %206, %v26_v3  }
  0x1d   :  { %207 = vset.pattern.permute.xlu1 %v247_v1  ;;  %95 = vperm.xlu0 %206, %v73_v5  }
  0x1e   :  { %76 = vperm.xlu1 %207, %v73_v5  }
  0x21   :  { %210 = vset.pattern.permute.xlu0 %v249_v6 }
  0x22   :  { %208 = vset.pattern.permute.xlu1 %v248_v4  ;;  %115 = vperm.xlu0 %210, %v73_v5  }
  0x23   :  { %85 = vperm.xlu1 %208, %v73_v5  }
  0x26   :  { %213 = vset.pattern.permute.xlu0 %v250_v7 }
  0x27   :  { %209 = vset.pattern.permute.xlu1 %v251_v8  ;;  %145 = vperm.xlu0 %213, %v73_v5  }
  0x28   :  { %105 = vperm.xlu1 %209, %v73_v5  }
  0x2b   :  { %216 = vset.pattern.permute.xlu0 %v252_v9 }
  0x2c   :  { %211 = vset.pattern.permute.xlu1 %v253_v10  ;;  %175 = vperm.xlu0 %216, %v73_v5  }
  0x2d   :  { %125 = vperm.xlu1 %211, %v73_v5  }
  0x31   :  { %212 = vset.pattern.permute.xlu1 %v254_v11 }
  0x32   :  { %135 = vperm.xlu1 %212, %v73_v5  }
  0x36   :  { %214 = vset.pattern.permute.xlu1 %v255_v12 }
  0x37   :  { %155 = vperm.xlu1 %214, %v73_v5  }
  0x3b   :  { %215 = vset.pattern.permute.xlu1 %v256_v13 }
  0x3c   :  { %165 = vperm.xlu1 %215, %v73_v5  }
  0x8a   :  { %v63_v14 = vpop.permute.xlu1 %62  ;;  %v31_v15 = vpop.permute.xlu0 %30 }
  0x8b   :  { %v42_v20 = vmul.f32 %v185_v16, %v31_v15 }
  0x8f   :  { %v36_v18 = vpop.permute.xlu1 %35  ;;  %v47_v19 = vpop.permute.xlu0 %46 }
  0x90   :  { %v57_v21 = vmul.f32 %v186_v17, %v47_v19  ;;  %v43_v26 = vmul.f32 %v185_v16, %v36_v18 }
  0x92   :  { %v59_v22 = vadd.f32 %v57_v21, %v42_v20 }
  0x94   :  { %v69_v23 = vadd.f32 %v63_v14, %v59_v22  ;;  %v51_v24 = vpop.permute.xlu1 %50  ;;  %v67_v30 = vpop.permute.xlu0 %66 }
  0x95   :  { %v58_v25 = vmul.f32 %v186_v17, %v51_v24 }
  0x96   :  { %217 = vtanh.f32 %v69_v23 }
  0x97   :  { %v60_v29 = vadd.f32 %v58_v25, %v43_v26 }
  0x98   :  { %v96_v39 = vpop.permute.xlu0 %95 }
  0x99   :  { %v77_v28 = vpop.permute.xlu1 %76  ;;  %v70_v32 = vadd.f32 %v67_v30, %v60_v29 }
  0x9b   :  { %219 = vtanh.f32 %v70_v32 }
  0x9d   :  { %v116_v53 = vpop.permute.xlu0 %115 }
  0x9e   :  { %v86_v33 = vpop.permute.xlu1 %85 }
  0xa2   :  { %v146_v3 = vpop.permute.xlu0 %145 }
  0xa3   :  { %v218_v38 = vpop.eup %217  ;;  %v106_v40 = vpop.permute.xlu1 %105 }
  0xa4   :  { %v82_v41 = vrot.slane %v218_v38, %v81_v34  ;;  %v101_v42 = vrot.slane %v218_v38, %v100_v35  ;;  %v91_v43 = vrot.slane %v218_v38, %v90_v36  ;;  %v111_v47 = vrot.slane %v218_v38, %v110_v37 }
  0xa5   :  { %v121_v50 = vrot.slane %v218_v38, %v120_v44  ;;  %v131_v60 = vrot.slane %v218_v38, %v130_v51  ;;  %v151_v62 = vrot.slane %v218_v38, %v150_v56  ;;  %v141_v1 = vrot.slane %v218_v38, %v140_v57 }
  0xa6   :  { %v83_v45 = vmul.f32 %v82_v41, %v77_v28  ;;  %v92_v46 = vmul.f32 %v91_v43, %v86_v33  ;;  %v102_v48 = vmul.f32 %v101_v42, %v96_v39  ;;  %v112_v55 = vmul.f32 %v111_v47, %v106_v40 }
  0xa7   :  { %v122_v58 = vmul.f32 %v121_v50, %v116_v53  ;;  %v152_v6 = vmul.f32 %v151_v62, %v146_v3  ;;  %v176_v16 = vpop.permute.xlu0 %175 }
  0xa8   :  { %v93_v49 = vadd.f32 %v92_v46, %v83_v45  ;;  %v126_v52 = vpop.permute.xlu1 %125  ;;  %v220_v2 = vpop.eup %219 }
  0xa9   :  { %v132_v0 = vmul.f32 %v131_v60, %v126_v52  ;;  %v161_v9 = vrot.slane %v220_v2, %v81_v34  ;;  %v171_v12 = vrot.slane %v220_v2, %v90_v36 }
  0xaa   :  { %v103_v54 = vadd.f32 %v102_v48, %v93_v49 }
  0xac   :  { %v113_v59 = vadd.f32 %v112_v55, %v103_v54 }
  0xad   :  { %v136_v61 = vpop.permute.xlu1 %135 }
  0xae   :  { %v123_v63 = vadd.f32 %v122_v58, %v113_v59  ;;  %v142_v5 = vmul.f32 %v141_v1, %v136_v61 }
  0xb0   :  { %v133_v4 = vadd.f32 %v132_v0, %v123_v63 }
  0xb2   :  { %v143_v7 = vadd.f32 %v142_v5, %v133_v4  ;;  %v156_v8 = vpop.permute.xlu1 %155 }
  0xb3   :  { %v162_v11 = vmul.f32 %v161_v9, %v156_v8 }
  0xb4   :  { %v153_v10 = vadd.f32 %v152_v6, %v143_v7 }
  0xb6   :  { %v163_v14 = vadd.f32 %v162_v11, %v153_v10 }
  0xb7   :  { %v166_v13 = vpop.permute.xlu1 %165 }
  0xb8   :  { %v172_v15 = vmul.f32 %v171_v12, %v166_v13 }
  0xba   :  { %v173_v17 = vadd.f32 %v172_v15, %v163_v14 }
  0xbc   :  { %v178_v18 = vadd.f32 %v176_v16, %v173_v17 }
  0xbe   :  { %179 = vst [vmem:[%s286_s2] sm:$0xff] %v178_v18 }
  0xbf   :  { %184 = vsyncpa [#allocation3], 1 }

</bundles_post_ra>
